<compile_context>
chip_gen: v7x
topology: tpu7x:2x2x1
jax: 0.10.0
libtpu: 0.0.40
codegen_flags: <defaults>
</compile_context>

<pallas_src>
import functools
import math

import jax
import jax.numpy as jnp
from jax.experimental import pallas as pl
from jax.experimental.pallas import tpu as pltpu


def _round_up(a, b):
    return -(-a // b) * b


def _cosine_basis_linear_kernel(x_ref, s_ref, w2_ref, b2_ref, o_ref):
    # x_ref : (tile_rows, k_dim)               f32 -- `group` flat inputs per row (+ zero pad cols)
    # s_ref : (k_dim, group*n_basis)           f32 -- block-diagonal copies of i*pi
    # w2_ref: (group*n_basis, group*out_size)  f32 -- block-diagonal copies of W.T
    # b2_ref: (1, group*out_size)              f32 -- bias tiled `group` times
    # o_ref : (tile_rows, group*out_size)      f32 -- row-major == (tile_rows*group, out_size)
    phase = jnp.dot(x_ref[...], s_ref[...], preferred_element_type=jnp.float32)
    emb = jnp.cos(phase)                                   # cosine basis functions
    out = jnp.dot(emb, w2_ref[...], preferred_element_type=jnp.float32)
    o_ref[...] = out + b2_ref[...]


@functools.partial(
    jax.jit, static_argnames=("n_basis_functions", "out_size", "tile_n", "group"))
def cosine_basis_linear(x, weight, bias, *, n_basis_functions, out_size,
                        tile_n=8192, group=None):
    """JAX/Pallas equivalent of CosineBasisLinear.forward.

    Args:
      x:      float32 array of arbitrary shape.
      weight: (out_size, n_basis_functions) -- same layout as torch nn.Linear.weight.
      bias:   (out_size,)
      tile_n: row tile measured in flattened input elements.
      group:  how many consecutive flat inputs share one sublane row
              (None -> auto; prefers group*out_size to be a multiple of 128).
    Returns:
      float32 array with shape x.shape + (out_size,).
    """
    if group is None:
        cands = [g for g in range(1, 9) if (g * out_size) % 128 == 0]
        group = cands[0] if cands else max(1, min(8, -(-128 // out_size)))

    orig_shape = x.shape
    x_flat = x.reshape(-1).astype(jnp.float32)
    n = x_flat.shape[0]

    out_w = group * out_size            # lane width of the output tile
    emb_w = group * n_basis_functions   # lane width of the embedding / matmul K
    k_dim = _round_up(group, 8)         # phase-matmul K, padded to sublane granularity

    # ---- choose an effective row tile (static Python arithmetic) ----------------
    row_align = group * 8               # keeps the sublane dim of every block a multiple of 8
    n_ceil = _round_up(max(n, 1), row_align)
    tn = min(_round_up(tile_n, row_align), n_ceil)
    if n_ceil >= 2 * row_align:
        # Keep at least 2 grid steps so v7x's 2 TensorCores both get work
        # (costs only ~0.35us of extra per-step overhead on single-TC chips).
        tn = min(tn, _round_up(-(-n_ceil // 2), row_align))
    tn = max(tn, row_align)
    tile_rows = tn // group

    n_pad = _round_up(max(n, 1), tn)
    rows_pad = n_pad // group
    grid = (n_pad // tn,)

    x2 = jnp.pad(x_flat, (0, n_pad - n)).reshape(rows_pad, group)
    x2 = jnp.pad(x2, ((0, 0), (0, k_dim - group)))                     # (rows_pad, k_dim)

    # Block-diagonal phase matrix: S[g, g*n_basis + k] = (k+1)*pi  (zero pad rows).
    i_pi = jnp.arange(1, n_basis_functions + 1, dtype=jnp.float32) * math.pi
    eye_g = jnp.eye(group, dtype=jnp.float32)
    s = jnp.kron(eye_g, i_pi[None, :])                                  # (group, emb_w)
    s = jnp.pad(s, ((0, k_dim - group), (0, 0)))                        # (k_dim, emb_w)

    # Block-diagonal weight: W2[g*n_basis + k, g*out_size + j] = W.T[k, j].
    wT = weight.astype(jnp.float32).T                                   # (n_basis, out_size)
    w2 = jnp.kron(eye_g, wT)                                            # (emb_w, out_w)
    b2 = jnp.tile(bias.astype(jnp.float32), group).reshape(1, out_w)    # (1, out_w)

    out2 = pl.pallas_call(
        _cosine_basis_linear_kernel,
        out_shape=jax.ShapeDtypeStruct((rows_pad, out_w), jnp.float32),
        grid_spec=pltpu.PrefetchScalarGridSpec(
            num_scalar_prefetch=0,
            grid=grid,
            in_specs=[
                pl.BlockSpec((tile_rows, k_dim), lambda i: (i, 0)),
                pl.BlockSpec((k_dim, emb_w), lambda i: (0, 0)),
                pl.BlockSpec((emb_w, out_w), lambda i: (0, 0)),
                pl.BlockSpec((1, out_w), lambda i: (0, 0)),
            ],
            out_specs=pl.BlockSpec((tile_rows, out_w), lambda i: (i, 0)),
        ),
        compiler_params=pltpu.CompilerParams(
            dimension_semantics=("parallel",)),
    )(x2, s, w2, b2)

    # (rows_pad, group*out_size) row-major == (n_pad, out_size): plain reshape, no shuffle.
    out = out2.reshape(n_pad, out_size)[:n]
    return out.reshape(*orig_shape, out_size)


def _reference(x, weight, bias, n_basis_functions, out_size):
    i_pi = jnp.arange(1, n_basis_functions + 1, dtype=jnp.float32) * jnp.pi
    emb = jnp.cos(x[..., None] * i_pi)                       # x.shape + (n_basis,)
    h = emb.reshape(-1, n_basis_functions)
    out = h @ weight.T + bias
    return out.reshape(*x.shape, out_size)


if __name__ == "__main__":
    n_basis_functions = 64
    out_size = 32

    key = jax.random.PRNGKey(0)
    k_x, k_w, k_b = jax.random.split(key, 3)

    # Example input: quantile thresholds, shape (batch=2, n_taus=8) as in IQN.
    x = jax.random.uniform(k_x, (2, 8), dtype=jnp.float32)

    # Deterministic nn.Linear-style init: U(-1/sqrt(in), 1/sqrt(in)).
    bound = 1.0 / (n_basis_functions ** 0.5)
    weight = jax.random.uniform(
        k_w, (out_size, n_basis_functions), minval=-bound, maxval=bound,
        dtype=jnp.float32)
    bias = jax.random.uniform(
        k_b, (out_size,), minval=-bound, maxval=bound, dtype=jnp.float32)

    out = cosine_basis_linear(
        x, weight, bias,
        n_basis_functions=n_basis_functions, out_size=out_size)
    out = jax.block_until_ready(out)

    ref = _reference(x, weight, bias, n_basis_functions, out_size)
    assert out.shape == x.shape + (out_size,), out.shape
    assert jnp.allclose(out, ref, atol=1e-4, rtol=1e-4), float(
        jnp.max(jnp.abs(out - ref)))

    # Also exercise a larger, multi-tile case (multiple grid steps, padding path).
    x_big = jax.random.uniform(k_x, (7, 33, 21), dtype=jnp.float32)
    out_big = jax.block_until_ready(cosine_basis_linear(
        x_big, weight, bias,
        n_basis_functions=n_basis_functions, out_size=out_size))
    ref_big = _reference(x_big, weight, bias, n_basis_functions, out_size)
    assert out_big.shape == x_big.shape + (out_size,), out_big.shape
    assert jnp.allclose(out_big, ref_big, atol=1e-4, rtol=1e-4), float(
        jnp.max(jnp.abs(out_big - ref_big)))

    print("KERNEL_OK")
</pallas_src>

<mosaic_0001>
module attributes {stable_mosaic.version = 11 : i64} {
  func.func @_cosine_basis_linear_kernel(%arg0: i32, %arg1: memref<8x8xf32, #tpu.memory_space<vmem>>, %arg2: memref<8x256xf32, #tpu.memory_space<vmem>>, %arg3: memref<256x128xf32, #tpu.memory_space<vmem>>, %arg4: memref<1x128xf32, #tpu.memory_space<vmem>>, %arg5: memref<8x128xf32, #tpu.memory_space<vmem>>) attributes {dimension_semantics = [#tpu.dimension_semantics<parallel>], iteration_bounds = array<i64: 1>, scalar_prefetch = 0 : i64, scratch_operands = 0 : i64, tpu.core_type = #tpu.core_type<tc>, window_params = [{transform_indices = @transform_0, window_bounds = array<i64: 8, 8>}, {pipeline_mode = #tpu.pipeline_mode<synchronous>, transform_indices = @transform_1, window_bounds = array<i64: 8, 256>}, {pipeline_mode = #tpu.pipeline_mode<synchronous>, transform_indices = @transform_2, window_bounds = array<i64: 256, 128>}, {pipeline_mode = #tpu.pipeline_mode<synchronous>, transform_indices = @transform_3, window_bounds = array<i64: 1, 128>}, {transform_indices = @transform_4, window_bounds = array<i64: 8, 128>}]} {
    %c0 = arith.constant 0 : index
    %c0_0 = arith.constant 0 : index
    %0 = vector.load %arg1[%c0, %c0_0] : memref<8x8xf32, #tpu.memory_space<vmem>>, vector<8x8xf32>
    %c0_1 = arith.constant 0 : index
    %c0_2 = arith.constant 0 : index
    %1 = vector.load %arg2[%c0_1, %c0_2] : memref<8x256xf32, #tpu.memory_space<vmem>>, vector<8x256xf32>
    %cst = arith.constant dense<0.000000e+00> : vector<8x256xf32>
    %2 = tpu.matmul %0, %1, %cst {dimension_numbers = #tpu.dot_dimension_numbers<[1], [0], [0], [1], [0, 0, 1, 1], [], []>} : vector<8x8xf32>, vector<8x256xf32>, vector<8x256xf32> -> vector<8x256xf32>
    %3 = math.cos %2 : vector<8x256xf32>
    %c0_3 = arith.constant 0 : index
    %c0_4 = arith.constant 0 : index
    %4 = vector.load %arg3[%c0_3, %c0_4] : memref<256x128xf32, #tpu.memory_space<vmem>>, vector<256x128xf32>
    %cst_5 = arith.constant dense<0.000000e+00> : vector<8x128xf32>
    %5 = tpu.matmul %3, %4, %cst_5 {dimension_numbers = #tpu.dot_dimension_numbers<[1], [0], [0], [1], [0, 0, 1, 1], [], []>} : vector<8x256xf32>, vector<256x128xf32>, vector<8x128xf32> -> vector<8x128xf32>
    %c0_6 = arith.constant 0 : index
    %c0_7 = arith.constant 0 : index
    %6 = vector.load %arg4[%c0_6, %c0_7] : memref<1x128xf32, #tpu.memory_space<vmem>>, vector<1x128xf32>
    %7 = vector.broadcast %6 : vector<1x128xf32> to vector<8x128xf32>
    %8 = arith.addf %5, %7 : vector<8x128xf32>
    %c0_8 = arith.constant 0 : index
    %c0_9 = arith.constant 0 : index
    %9 = vector.load %arg5[%c0_8, %c0_9] : memref<8x128xf32, #tpu.memory_space<vmem>>, vector<8x128xf32>
    tpu.vector_store %arg5[%c0_8, %c0_9], %8 {strides = array<i32>} : memref<8x128xf32, #tpu.memory_space<vmem>>, vector<8x128xf32>,
    return
  }
  func.func @transform_0(%arg0: i32) -> (i32, i32) {
    %c0_i32 = arith.constant 0 : i32
    %c0_i32_0 = arith.constant 0 : i32
    return %arg0, %c0_i32 : i32, i32
  }
  func.func @transform_1(%arg0: i32) -> (i32, i32) {
    %c0_i32 = arith.constant 0 : i32
    %c0_i32_0 = arith.constant 0 : i32
    %c0_i32_1 = arith.constant 0 : i32
    return %c0_i32, %c0_i32_0 : i32, i32
  }
  func.func @transform_2(%arg0: i32) -> (i32, i32) {
    %c0_i32 = arith.constant 0 : i32
    %c0_i32_0 = arith.constant 0 : i32
    %c0_i32_1 = arith.constant 0 : i32
    return %c0_i32, %c0_i32_0 : i32, i32
  }
  func.func @transform_3(%arg0: i32) -> (i32, i32) {
    %c0_i32 = arith.constant 0 : i32
    %c0_i32_0 = arith.constant 0 : i32
    %c0_i32_1 = arith.constant 0 : i32
    return %c0_i32, %c0_i32_0 : i32, i32
  }
  func.func @transform_4(%arg0: i32) -> (i32, i32) {
    %c0_i32 = arith.constant 0 : i32
    %c0_i32_0 = arith.constant 0 : i32
    return %arg0, %c0_i32 : i32, i32
  }
}

</mosaic_0001>

<bundles_post_ra>
// kernel: tile.8
= control target key start
LH: loop header
LB: loop body
LE: loop exit
PB: predicated region body
PF: predicated region fallthrough
CT: control target
= control target key end

     0   :  { %s22_s0 = inlined_call_operand.vmem [shape: f32[32], index: 0, kind: input, shape index: {}]   ;;  %s23_s1 = inlined_call_operand.vmem [shape: f32[4,32], index: 1, kind: output, shape index: {}]  }
   0x1   :  { %v4_v0 = vld [vmem:[%s22_s0] ss:$0 sm:$0xff] }
   0x2   :  { %5 = vst [vmem:[%s23_s1] sm:$0xf] %v4_v0 }

// kernel: tile.9
= control target key start
LH: loop header
LB: loop body
LE: loop exit
PB: predicated region body
PF: predicated region fallthrough
CT: control target
= control target key end

     0   :  { %vm7_vm0 = vcmask 261120   ;;  %s37_s8 = smov 32   ;;  %s38_s9 = smov 64   ;;  %vm13_vm1 = vcmask 1048320   ;;  %vm19_vm2 = vcmask 785920   ;;  %vm25_vm3 = vcmask 523520   ;;  %s55_s0 = inlined_call_operand.vmem [shape: f32[4,32], index: 0, kind: input, shape index: {}]   ;;  %s56_s1 = inlined_call_operand.vmem [shape: f32[1,128], index: 1, kind: output, shape index: {}]  }
   0x1   :  { %v4_v0 = vld [vmem:[%s55_s0] sm:$0xf]  ;;  %s36_s0 = smov 96  }
   0x2   :  { %5 = vst [vmem:[#allocation1] sm:$0xf] %v4_v0 }
   0x9   :  { %v10_v1 = vld [vmem:[#allocation1 + $0x3] sm:$0x1]   ;;  %v22_v2 = vld [vmem:[#allocation1 + $0x1] sm:$0x1]   ;;  %v6_v3 = vld [vmem:[#allocation1] sm:$0x1]  }
   0xa   :  { %11 = vrot.lane.b32.xlu0 %v10_v1, %s36_s0  ;;  %23 = vrot.lane.b32.xlu1 %v22_v2, %s37_s8  ;;  %v16_v4 = vld [vmem:[#allocation1 + $0x2] sm:$0x1]   ;;  %8 = vst.msk [vmem:[#allocation0] sm:$0x1] %vm7_vm0, %v6_v3  }
   0xe   :  { %17 = vrot.lane.b32.xlu0 %v16_v4, %s38_s9 }
  0x7c   :  { %v12_v5 = vpop.permute.xlu0 %11   ;;  %v24_v6 = vpop.permute.xlu1 %23  }
  0x7d   :  { %14 = vst.msk [vmem:[#allocation0] sm:$0x1] %vm13_vm1, %v12_v5  }
  0x80   :  { %v18_v7 = vpop.permute.xlu0 %17  }
  0x81   :  { %20 = vst.msk [vmem:[#allocation0] sm:$0x1] %vm19_vm2, %v18_v7  }
  0x82   :  { %26 = vst.msk [vmem:[#allocation0] sm:$0x1] %vm25_vm3, %v24_v6  }
  0x89   :  { %v30_v8 = vld [vmem:[#allocation0] sm:$0x1] }
  0x8a   :  { %32 = vst [vmem:[%s56_s1] sm:$0x1] %v30_v8 }

// kernel: cosine_basis_linear.1
= control target key start
LH: loop header
LB: loop body
LE: loop exit
PB: predicated region body
PF: predicated region fallthrough
CT: control target
= control target key end

     0   :  { %v515_v2 = vmov 0.0   ;;  %vm20_vm0 = vcmask 64512   ;;  %s737_s1 = inlined_call_operand.vmem [shape: f32[8,256], index: 1, kind: input, shape index: {}]   ;;  %s738_s0 = inlined_call_operand.vmem [shape: f32[8,8], index: 0, kind: input, shape index: {}]   ;;  %s739_s2 = inlined_call_operand.vmem [shape: f32[256,128], index: 2, kind: input, shape index: {}]   ;;  %s740_s3 = inlined_call_operand.vmem [shape: f32[1,128], index: 3, kind: input, shape index: {}]   ;;  %s741_s4 = inlined_call_operand.vmem [shape: f32[8,128], index: 4, kind: output, shape index: {}]  }
   0x1   :  { %v19_v0 = vld [vmem:[%s737_s1 + $0x8] sm:$0xff]  ;;  %v18_v1 = vld [vmem:[%s737_s1] sm:$0xff]  ;;  %88 = vmatprep.mubr.f32.mxu0 %v515_v2  ;;  %v319_v10 = vld [vmem:[%s739_s2 + $0x90] sm:$0xff] }
   0x2   :  { %v17_v3 = vld [vmem:[%s738_s0] sm:$0xff]  ;;  %24 = vmatprep.subr.mxu0 %v19_v0  ;;  %v318_v5 = vld [vmem:[%s739_s2 + $0x88] sm:$0xff]  ;;  %v320_v11 = vld [vmem:[%s739_s2 + $0x98] sm:$0xff] }
   0x3   :  { %25 = vmatpush1.msra.mxu0 %v18_v1  ;;  %v317_v4 = vld [vmem:[%s739_s2 + $0x80] sm:$0xff]  ;;  %v302_v8 = vld [vmem:[%s739_s2 + $0x8] sm:$0xff]  ;;  %v464_v12 = vpack.c.bf16 %v320_v11, %v319_v10  ;;  %v303_v13 = vld [vmem:[%s739_s2 + $0x10] sm:$0xff]  ;;  %v516_v10 = vmov 683565275  }
   0x4   :  { %415 = vmatmul.mubr.msk.f32.vlgmr.msra.gmra.mrb[0].mxu0 %vm20_vm0, %v17_v3  ;;  %v460_v6 = vpack.c.bf16 %v318_v5, %v317_v4  ;;  %v301_v7 = vld [vmem:[%s739_s2] sm:$0xff]  ;;  %v304_v14 = vld [vmem:[%s739_s2 + $0x18] sm:$0xff]  ;;  %v322_v17 = vld [vmem:[%s739_s2 + $0xa8] sm:$0xff] }
   0x5   :  { %v462_v9 = vpack.c.bf16 %v302_v8, %v301_v7  ;;  %v466_v15 = vpack.c.bf16 %v304_v14, %v303_v13  ;;  %v321_v16 = vld [vmem:[%s739_s2 + $0xa0] sm:$0xff]  ;;  %v306_v20 = vld [vmem:[%s739_s2 + $0x28] sm:$0xff]  ;;  %v323_v22 = vld [vmem:[%s739_s2 + $0xb0] sm:$0xff]  ;;  %v517_v14 = vmov 2475754826  }
   0x6   :  { %461 = vmatprep.subr.bf16.mxu1 %v460_v6  ;;  %v468_v18 = vpack.c.bf16 %v322_v17, %v321_v16  ;;  %v305_v19 = vld [vmem:[%s739_s2 + $0x20] sm:$0xff]  ;;  %v324_v23 = vld [vmem:[%s739_s2 + $0xb8] sm:$0xff]  ;;  %v307_v25 = vld [vmem:[%s739_s2 + $0x30] sm:$0xff]  ;;  %v518_v16 = vmov 2131351028  }
   0x7   :  { %463 = vmatpush3.bf16.msra.mxu1 %v462_v9  ;;  %v470_v21 = vpack.c.bf16 %v306_v20, %v305_v19  ;;  %v472_v24 = vpack.c.bf16 %v324_v23, %v323_v22  ;;  %v308_v26 = vld [vmem:[%s739_s2 + $0x38] sm:$0xff]  ;;  %v325_v28 = vld [vmem:[%s739_s2 + $0xc0] sm:$0xff]  ;;  %v326_v29 = vld [vmem:[%s739_s2 + $0xc8] sm:$0xff]  ;;  %v520_v20 = vmov 920167782  }
   0x8   :  { %465 = vmatprep.subr.bf16.mxu1 %v464_v12  ;;  %v474_v27 = vpack.c.bf16 %v308_v26, %v307_v25  ;;  %v309_v30 = vld [vmem:[%s739_s2 + $0x40] sm:$0xff]  ;;  %v476_v31 = vpack.c.bf16 %v326_v29, %v325_v28  ;;  %v310_v32 = vld [vmem:[%s739_s2 + $0x48] sm:$0xff]  ;;  %v327_v33 = vld [vmem:[%s739_s2 + $0xd0] sm:$0xff] }
   0x9   :  { %v328_v34 = vld [vmem:[%s739_s2 + $0xd8] sm:$0xff]  ;;  %v478_v35 = vpack.c.bf16 %v310_v32, %v309_v30  ;;  %v311_v37 = vld [vmem:[%s739_s2 + $0x50] sm:$0xff]  ;;  %v329_v39 = vld [vmem:[%s739_s2 + $0xe0] sm:$0xff] }
   0xa   :  { %v480_v36 = vpack.c.bf16 %v328_v34, %v327_v33  ;;  %v312_v38 = vld [vmem:[%s739_s2 + $0x58] sm:$0xff]  ;;  %v330_v40 = vld [vmem:[%s739_s2 + $0xe8] sm:$0xff]  ;;  %v313_v43 = vld [vmem:[%s739_s2 + $0x60] sm:$0xff] }
   0xb   :  { %467 = vmatpush3.bf16.msra.mxu1 %v466_v15  ;;  %v482_v41 = vpack.c.bf16 %v312_v38, %v311_v37  ;;  %v484_v42 = vpack.c.bf16 %v330_v40, %v329_v39  ;;  %v314_v44 = vld [vmem:[%s739_s2 + $0x68] sm:$0xff]  ;;  %v331_v45 = vld [vmem:[%s739_s2 + $0xf0] sm:$0xff]  ;;  %v332_v46 = vld [vmem:[%s739_s2 + $0xf8] sm:$0xff] }
   0xc   :  { %469 = vmatprep.subr.bf16.mxu1 %v468_v18  ;;  %v486_v47 = vpack.c.bf16 %v314_v44, %v313_v43  ;;  %v488_v48 = vpack.c.bf16 %v332_v46, %v331_v45  ;;  %v315_v49 = vld [vmem:[%s739_s2 + $0x70] sm:$0xff]  ;;  %v316_v50 = vld [vmem:[%s739_s2 + $0x78] sm:$0xff]  ;;  %v519_v18 = vmov 2102212464  }
   0xd   :  { %v490_v51 = vpack.c.bf16 %v316_v50, %v315_v49 }
   0xf   :  { %471 = vmatpush3.bf16.msra.mxu1 %v470_v21 }
  0x10   :  { %473 = vmatprep.subr.bf16.mxu1 %v472_v24 }
  0x13   :  { %475 = vmatpush3.bf16.msra.mxu1 %v474_v27  ;;  %v521_v27 = vmov 1326507024  }
  0x14   :  { %477 = vmatprep.subr.bf16.mxu1 %v476_v31 }
  0x17   :  { %479 = vmatpush3.bf16.msra.mxu1 %v478_v35 }
  0x18   :  { %481 = vmatprep.subr.bf16.mxu1 %v480_v36 }
  0x1b   :  { %483 = vmatpush3.bf16.msra.mxu1 %v482_v41 }
  0x1c   :  { %485 = vmatprep.subr.bf16.mxu1 %v484_v42 }
  0x1f   :  { %487 = vmatpush3.bf16.msra.mxu1 %v486_v47 }
  0x20   :  { %489 = vmatprep.subr.bf16.mxu1 %v488_v48 }
  0x23   :  { %491 = vmatpush3.bf16.msra.mxu1 %v490_v51 }
  0xd7   :  { %v652_v52 = vpop.f32.mrb[0].mxu0 }
  0xd8   :  { %v95_v53 = vand.u32 2147483647, %v652_v52  ;;  %v98_v54 = vand.u32 2139095040, %v652_v52  ;;  %v656_v55 = vpop.f32.mrb[1].mxu0  ;;  %vm97_vm15 = vcmp.lt.s32.totalorder %v652_v52, 0 }
  0xd9   :  { %v201_v56 = vand.u32 2139095040, %v656_v55  ;;  %v198_v59 = vand.u32 2147483647, %v656_v55 }
  0xda   :  { %v99_v57 = vshrl.u32 %v98_v54, 23  ;;  %v102_v58 = vand.u32 8388607, %v95_v53  ;;  %vm710_vm0 = vcmp.le.f32.partialorder %v95_v53, 0.7853982 }
  0xdb   :  { %v202_v60 = vshrl.u32 %v201_v56, 23  ;;  %v664_v1 = vand.u32 8388607, %v198_v59 }
  0xdc   :  { %v416_v61 = vadd.s32 4294967169, %v99_v57  ;;  %v103_v0 = vor.u32 8388608, %v102_v58 }
  0xdd   :  { %v420_v62 = vadd.s32 4294967169, %v202_v60  ;;  %v206_v8 = vor.u32 8388608, %v664_v1 }
  0xde   :  { %v105_v63 = vadd.s32 1, %v416_v61  ;;  %v666_v7 = vshll.u32 %v103_v0, 8 }
  0xdf   :  { %v208_v2 = vadd.s32 1, %v420_v62 }
  0xe0   :  { %vm106_vm1 = vcmp.gt.s32.totalorder %v105_v63, 0 }
  0xe1   :  { %v107_v3 = vsel %vm106_vm1, %v105_v63, 0  ;;  %vm209_vm2 = vcmp.gt.s32.totalorder %v208_v2, 0  ;;  %vm200_vm1 = vcmp.lt.s32.totalorder %v656_v55, 0 }
  0xe2   :  { %v108_v4 = vshrl.u32 %v107_v3, 5  ;;  %v109_v5 = vand.u32 31, %v107_v3  ;;  %v210_v6 = vsel %vm209_vm2, %v208_v2, 0  ;;  %v246_v2 = vshll.u32 %v206_v8, 8 }
  0xe3   :  { %v669_v12 = vshrl.u32 %v210_v6, 5  ;;  %v212_v13 = vand.u32 31, %v210_v6  ;;  %vm199_vm2 = vcmp.le.f32.partialorder %v198_v59, 0.7853982 }
  0xe4   :  { %v110_v9 = vsub.s32 32, %v109_v5  ;;  %v112_v11 = vshll.u32 %v516_v10, %v109_v5  ;;  %v115_v15 = vshll.u32 %v517_v14, %v109_v5  ;;  %v118_v17 = vshll.u32 %v518_v16, %v109_v5 }
  0xe5   :  { %v121_v19 = vshll.u32 %v519_v18, %v109_v5  ;;  %v124_v21 = vshll.u32 %v520_v20, %v109_v5  ;;  %vm127_vm3 = vcmp.lt.s32.totalorder %v108_v4, 1  ;;  %vm128_vm4 = vcmp.lt.s32.totalorder %v108_v4, 2 }
  0xe6   :  { %v113_v22 = vshrl.u32 %v517_v14, %v110_v9  ;;  %v116_v23 = vshrl.u32 %v518_v16, %v110_v9  ;;  %v119_v24 = vshrl.u32 %v519_v18, %v110_v9  ;;  %v111_v25 = vshrl.u32 %v516_v10, %v110_v9 }
  0xe7   :  { %v122_v26 = vshrl.u32 %v520_v20, %v110_v9  ;;  %v125_v28 = vshrl.u32 %v521_v27, %v110_v9  ;;  %v213_v32 = vsub.s32 32, %v212_v13  ;;  %vm129_vm5 = vcmp.lt.s32.totalorder %v108_v4, 3 }
  0xe8   :  { %v114_v29 = vor.u32 %v113_v22, %v112_v11  ;;  %v117_v30 = vor.u32 %v116_v23, %v115_v15  ;;  %v120_v31 = vor.u32 %v119_v24, %v118_v17  ;;  %vm130_vm6 = vcmp.lt.s32.totalorder %v108_v4, 4 }
  0xe9   :  { %v123_v33 = vor.u32 %v122_v26, %v121_v19  ;;  %v126_v34 = vor.u32 %v125_v28, %v124_v21  ;;  %v215_v42 = vshll.u32 %v516_v10, %v212_v13  ;;  %v216_v45 = vshrl.u32 %v517_v14, %v213_v32 }
  0xea   :  { %v131_v35 = vsel %vm127_vm3, %v111_v25, %v114_v29  ;;  %v132_v36 = vsel %vm130_vm6, %v120_v31, 2102212464  ;;  %v135_v37 = vsel %vm127_vm3, %v114_v29, %v117_v30  ;;  %v139_v38 = vsel %vm127_vm3, %v117_v30, %v120_v31 }
  0xeb   :  { %v133_v39 = vsel %vm129_vm5, %v117_v30, %v132_v36  ;;  %v136_v40 = vsel %vm130_vm6, %v123_v33, 920167782  ;;  %v140_v41 = vsel %vm130_vm6, %v126_v34, 1326507024  ;;  %v218_v46 = vshll.u32 %v517_v14, %v212_v13 }
  0xec   :  { %v137_v43 = vsel %vm129_vm5, %v120_v31, %v136_v40  ;;  %v141_v44 = vsel %vm129_vm5, %v123_v33, %v140_v41  ;;  %v134_v47 = vsel %vm128_vm4, %v131_v35, %v133_v39  ;;  %v219_v50 = vshrl.u32 %v518_v16, %v213_v32 }
  0xed   :  { %v138_v48 = vsel %vm128_vm4, %v135_v37, %v137_v43  ;;  %v142_v49 = vsel %vm128_vm4, %v139_v38, %v141_v44  ;;  %v217_v58 = vor.u32 %v216_v45, %v215_v42  ;;  %v221_v61 = vshll.u32 %v518_v16, %v212_v13 }
  0xee   :  { %v678_v51 = vmul.u32.u64.low %v666_v7, %v142_v49  ;;  %v679_v54 = vmul.u32.u64.high %v666_v7, %v142_v49, %v678_v51  ;;  %v682_v56 = vmul.u32.u64.low %v666_v7, %v138_v48  ;;  %v683_v57 = vmul.u32.u64.high %v666_v7, %v138_v48, %v682_v56 }
  0xef   :  { %v220_v60 = vor.u32 %v219_v50, %v218_v46  ;;  %v222_v62 = vshrl.u32 %v519_v18, %v213_v32  ;;  %v224_v63 = vshll.u32 %v519_v18, %v212_v13  ;;  %v225_v0 = vshrl.u32 %v520_v20, %v213_v32 }
  0xf0   :  { %v228_v1 = vshrl.u32 %v521_v27, %v213_v32  ;;  %v150_v3 = vmul.u32 %v666_v7, %v134_v47  ;;  %v214_v4 = vshrl.u32 %v516_v10, %v213_v32  ;;  %v227_v6 = vshll.u32 %v520_v20, %v212_v13 }
  0xf1   :  { %v223_v5 = vor.u32 %v222_v62, %v221_v61  ;;  %vm152_vm7 = vc.u32 %v679_v54, %v682_v56  ;;  %v153_v9 = vadd.s32 1, %v683_v57  ;;  %v226_v11 = vor.u32 %v225_v0, %v224_v63 }
  0xf2   :  { %vm230_vm8 = vcmp.lt.s32.totalorder %v669_v12, 1  ;;  %v229_v14 = vor.u32 %v228_v1, %v227_v6  ;;  %vm232_vm9 = vcmp.lt.s32.totalorder %v669_v12, 3  ;;  %vm233_vm10 = vcmp.lt.s32.totalorder %v669_v12, 4 }
  0xf3   :  { %v238_v15 = vsel %vm230_vm8, %v217_v58, %v220_v60  ;;  %v154_v8 = vsel %vm152_vm7, %v153_v9, %v683_v57  ;;  %v235_v16 = vsel %vm233_vm10, %v223_v5, 2102212464  ;;  %v239_v7 = vsel %vm233_vm10, %v226_v11, 920167782 }
  0xf4   :  { %v242_v10 = vsel %vm230_vm8, %v220_v60, %v223_v5  ;;  %v155_v17 = vadd.s32 %v154_v8, %v150_v3  ;;  %vm231_vm11 = vcmp.lt.s32.totalorder %v669_v12, 2  ;;  %v240_v13 = vsel %vm232_vm9, %v223_v5, %v239_v7 }
  0xf5   :  { %v243_v18 = vsel %vm233_vm10, %v229_v14, 1326507024  ;;  %v234_v19 = vsel %vm230_vm8, %v214_v4, %v217_v58  ;;  %v236_v20 = vsel %vm232_vm9, %v220_v60, %v235_v16  ;;  %v241_v21 = vsel %vm231_vm11, %v238_v15, %v240_v13 }
  0xf6   :  { %v244_v22 = vsel %vm232_vm9, %v226_v11, %v243_v18  ;;  %v156_v23 = vadd.s32 536870912, %v155_v17  ;;  %v693_v25 = vmul.u32.u64.low %v246_v2, %v241_v21  ;;  %v694_v26 = vmul.u32.u64.high %v246_v2, %v241_v21, %v693_v25 }
  0xf7   :  { %v245_v24 = vsel %vm231_vm11, %v242_v10, %v244_v22  ;;  %v237_v30 = vsel %vm231_vm11, %v234_v19, %v236_v20  ;;  %v151_v46 = vadd.s32 %v682_v56, %v679_v54  ;;  %vm290_vm9 = vweird.f32 %v656_v55 }
  0xf8   :  { %v696_v27 = vmul.u32.u64.low %v246_v2, %v245_v24  ;;  %v697_v28 = vmul.u32.u64.high %v246_v2, %v245_v24, %v696_v27  ;;  %v699_v29 = vshrl.u32 %v156_v23, 30  ;;  %v256_v12 = vadd.s32 1, %v694_v26 }
  0xf9   :  { %v253_v32 = vmul.u32 %v246_v2, %v237_v30  ;;  %vm187_vm10 = vweird.f32 %v652_v52 }
  0xfa   :  { %v158_v31 = vshll.u32 %v699_v29, 30  ;;  %vm255_vm12 = vc.u32 %v697_v28, %v693_v25  ;;  %v254_v3 = vadd.s32 %v693_v25, %v697_v28  ;;  %v181_v20 = vsub.s32 4, %v699_v29 }
  0xfb   :  { %v257_v34 = vsel %vm255_vm12, %v256_v12, %v694_v26 }
  0xfc   :  { %v159_v33 = vsub.s32 %v155_v17, %v158_v31  ;;  %v258_v35 = vadd.s32 %v257_v34, %v253_v32  ;;  %v182_v23 = vsel %vm97_vm15, %v181_v20, %v699_v29 }
  0xfd   :  { %v184_v26 = vsel %vm710_vm0, 0, %v182_v23 }
  0xfe   :  { %v161_v36 = vsub.s32 0, %v159_v33  ;;  %v259_v37 = vadd.s32 536870912, %v258_v35  ;;  %v188_v30 = vand.u32 3, %v184_v26 }
 0x100   :  { %v417_v38 = vmin.u32 %v161_v36, %v159_v33  ;;  %v260_v39 = vshrl.u32 %v259_v37, 30  ;;  %vm190_vm3 = vcmp.eq.s32.totalorder %v188_v30, 0  ;;  %vm193_vm4 = vcmp.eq.s32.totalorder %v188_v30, 2 }
 0x101   :  { %vm189_vm7 = vcmp.lt.s32.totalorder %v188_v30, 2 }
 0x102   :  { %v163_v40 = vclz %v417_v38  ;;  %v261_v41 = vshll.u32 %v260_v39, 30  ;;  %v284_v21 = vsub.s32 4, %v260_v39 }
 0x104   :  { %v418_v42 = vadd.s32 4294967294, %v163_v40  ;;  %v262_v43 = vsub.s32 %v258_v35, %v261_v41  ;;  %v285_v24 = vsel %vm200_vm1, %v284_v21, %v260_v39 }
 0x105   :  { %v287_v28 = vsel %vm199_vm2, 0, %v285_v24 }
 0x106   :  { %vm419_vm13 = vcmp.lt.s32.totalorder %v418_v42, 0  ;;  %v264_v45 = vsub.s32 0, %v262_v43  ;;  %v291_v12 = vand.u32 3, %v287_v28 }
 0x107   :  { %v166_v44 = vsel %vm419_vm13, 0, %v418_v42 }
 0x108   :  { %v167_v47 = vsub.s32 32, %v166_v44  ;;  %v171_v48 = vsub.s32 4294967266, %v166_v44  ;;  %v421_v49 = vmin.u32 %v264_v45, %v262_v43  ;;  %v168_v50 = vshll.u32 %v159_v33, %v166_v44  ;;  %v424_v44 = vld [vmem:[%s740_s3] ss:$0 sm:$0xff] }
 0x109   :  { %vm296_vm5 = vcmp.eq.s32.totalorder %v291_v12, 2  ;;  %vm293_vm6 = vcmp.eq.s32.totalorder %v291_v12, 0  ;;  %vm292_vm8 = vcmp.lt.s32.totalorder %v291_v12, 2 }
 0x10a   :  { %v169_v51 = vshrl.u32 %v151_v46, %v167_v47  ;;  %v172_v57 = vadd.s32 127, %v171_v48  ;;  %v266_v58 = vclz %v421_v49 }
 0x10c   :  { %v170_v60 = vor.u32 %v169_v51, %v168_v50  ;;  %v173_v61 = vshll.u32 %v172_v57, 23  ;;  %v422_v62 = vadd.s32 4294967294, %v266_v58 }
 0x10e   :  { %v174_v63 = vor.u32 4788187, %v173_v61  ;;  %vm423_vm14 = vcmp.lt.s32.totalorder %v422_v62, 0  ;;  %v177_v1 = vcvt.s32.f32 %v170_v60 }
 0x10f   :  { %v269_v2 = vsel %vm423_vm14, 0, %v422_v62 }
 0x110   :  { %v175_v0 = vand.u32 2147483647, %v174_v63  ;;  %v270_v4 = vsub.s32 32, %v269_v2  ;;  %v274_v5 = vsub.s32 4294967266, %v269_v2  ;;  %v271_v56 = vshll.u32 %v262_v43, %v269_v2 }
 0x112   :  { %v178_v54 = vmul.f32 %v177_v1, %v175_v0  ;;  %v272_v6 = vshrl.u32 %v254_v3, %v270_v4  ;;  %v275_v9 = vadd.s32 127, %v274_v5 }
 0x114   :  { %v179_v11 = vxor.u32 2147483648, %v178_v54  ;;  %v273_v14 = vor.u32 %v272_v6, %v271_v56  ;;  %v276_v15 = vshll.u32 %v275_v9, 23 }
 0x116   :  { %v180_v16 = vsel %vm97_vm15, %v179_v11, %v178_v54  ;;  %v277_v10 = vor.u32 4788187, %v276_v15  ;;  %v280_v13 = vcvt.s32.f32 %v273_v14 }
 0x117   :  { %v183_v7 = vsel %vm710_vm0, %v652_v52, %v180_v16 }
 0x118   :  { %v278_v17 = vand.u32 2147483647, %v277_v10  ;;  %507 = vcosq.f32 %v183_v7 }
 0x119   :  { %509 = vsinq.f32 %v183_v7 }
 0x11a   :  { %v281_v18 = vmul.f32 %v280_v13, %v278_v17 }
 0x11c   :  { %v282_v19 = vxor.u32 2147483648, %v281_v18 }
 0x11e   :  { %v283_v53 = vsel %vm200_vm1, %v282_v19, %v281_v18 }
 0x11f   :  { %v286_v22 = vsel %vm199_vm2, %v656_v55, %v283_v53 }
 0x120   :  { %511 = vcosq.f32 %v286_v22 }
 0x121   :  { %513 = vsinq.f32 %v286_v22 }
 0x122   :  { %v508_v25 = vpop.eup %507 }
 0x123   :  { %v510_v27 = vpop.eup %509  ;;  %v194_v59 = vxor.u32 2147483648, %v508_v25 }
 0x124   :  { %v191_v31 = vxor.u32 2147483648, %v510_v27 }
 0x125   :  { %v195_v36 = vsel %vm193_vm4, %v194_v59, %v510_v27 }
 0x126   :  { %v192_v35 = vsel %vm190_vm3, %v508_v25, %v191_v31 }
 0x127   :  { %v196_v39 = vsel %vm189_vm7, %v192_v35, %v195_v36 }
 0x128   :  { %v197_v42 = vsel %vm187_vm10, nan, %v196_v39 }
 0x12a   :  { %v512_v32 = vpop.eup %511 }
 0x12b   :  { %v514_v33 = vpop.eup %513  ;;  %v297_v34 = vxor.u32 2147483648, %v512_v32 }
 0x12c   :  { %v294_v29 = vxor.u32 2147483648, %v514_v33 }
 0x12d   :  { %v298_v37 = vsel %vm296_vm5, %v297_v34, %v514_v33 }
 0x12e   :  { %v295_v38 = vsel %vm293_vm6, %v512_v32, %v294_v29 }
 0x12f   :  { %v299_v40 = vsel %vm292_vm8, %v295_v38, %v298_v37 }
 0x130   :  { %v300_v41 = vsel %vm290_vm9, nan, %v299_v40 }
 0x131   :  { %404 = vmatprep.mubr.f32.mxu1 %v300_v41 }
 0x132   :  { %405 = vmatmul.mubr.f32.vlgmr.msra.gmra.mrb[0].mxu1 %v197_v42 }
 0x205   :  { %v457_v43 = vpop.f32.mrb[0].mxu1 }
 0x206   :  { %v458_v45 = vpop.f32.mrb[1].mxu1 }
 0x207   :  { %v459_v46 = vadd.f32 %v458_v45, %v457_v43 }
 0x209   :  { %v407_v47 = vadd.f32 %v459_v46, %v424_v44 }
 0x20b   :  { %410 = vst [vmem:[%s741_s4] sm:$0xff] %v407_v47 }

</bundles_post_ra>
